<compile_context>
chip_gen: v6e
topology: v6e:2x2x1
jax: 0.10.0
libtpu: 0.0.40
codegen_flags: <defaults>
</compile_context>

<pallas_src>
import functools

import jax
import jax.numpy as jnp
from jax import lax
from jax.experimental import pallas as pl
from jax.experimental.pallas import tpu as pltpu


def _critic_kernel(*refs, n_inputs, n_layers, activation):
    # refs = (x_0..x_{k-1}, w0_0..w0_{k-1}, b0, w1, b1, ..., w_{L-1}, b_{L-1}, out)
    x_refs = refs[:n_inputs]
    w0_refs = refs[n_inputs:2 * n_inputs]          # each [out0, d_i]  (torch layout)
    b0_ref = refs[2 * n_inputs]                    # [out0, 1]
    rest = refs[2 * n_inputs + 1:-1]               # (w1, b1, ..., w_{L-1}, b_{L-1})
    out_ref = refs[-1]                             # [out_dim, tb]

    # ---- Layer 0, feature-major output: h[f, n] = sum_i sum_k W0_i[f, k] * x_i[n, k]
    # (== (concat(x_0..x_{k-1}) @ W0).T, so the concat never materializes).
    # Contracting dim 1 of both operands is the well-supported "q @ k.T" form:
    # the batch axis lands on lanes with no explicit transpose.
    dn = (((1,), (1,)), ((), ()))
    h = lax.dot_general(w0_refs[0][...], x_refs[0][...], dn,
                        preferred_element_type=jnp.float32)
    for i in range(1, n_inputs):
        h = h + lax.dot_general(w0_refs[i][...], x_refs[i][...], dn,
                                preferred_element_type=jnp.float32)
    h = h + b0_ref[...]                            # [out0, tb] + [out0, 1]
    if n_layers > 1:                               # layer 0 is the last layer iff L == 1
        h = activation(h)

    # ---- Hidden layers 1..L-2 and the final linear layer, all lane-dense ----
    for j in range(1, n_layers):
        w = rest[2 * (j - 1)][...]                 # [out_j, in_j]
        b = rest[2 * (j - 1) + 1][...]             # [out_j, 1]
        h = jnp.dot(w, h, preferred_element_type=jnp.float32) + b
        if j < n_layers - 1:                       # last layer has no activation
            h = activation(h)

    out_ref[...] = h.astype(out_ref.dtype)         # lane-dense [out_dim, tb] store


def critic_forward(*xs, weights, biases, activation="tanh",
                   block_batch=4096, vmem_limit_bytes=None):
    """Critic forward pass.

    xs       : one or more [B, d_i] arrays (equivalent of torch.cat(x, -1))
    weights  : list of [in_i, out_i] arrays (transposed torch Linear weights)
    biases   : list of [1, out_i] (or [out_i]) arrays
    """
    act = {"tanh": jnp.tanh, "relu": lambda v: jnp.maximum(v, 0.0)}[activation]

    n_layers = len(weights)
    batch = int(xs[0].shape[0])
    in_dims = [int(x.shape[-1]) for x in xs]
    out_dim = int(weights[-1].shape[1])
    assert int(weights[0].shape[0]) == sum(in_dims)

    # Stream inputs in their native (common) dtype; bf16 inputs halve HBM traffic.
    xdt = jnp.result_type(*[x.dtype for x in xs])
    xs = tuple(x if x.dtype == xdt else x.astype(xdt) for x in xs)

    # Layer-0 weight split per input, in [out, in] layout for the feature-major
    # dot_general; remaining weights as [out, in]; biases as columns.
    w0_parts, off = [], 0
    for d in in_dims:
        w0_parts.append(weights[0][off:off + d].T.astype(xdt))   # [out0, d_i]
        off += d
    w_rest = [w.T.astype(jnp.float32) for w in weights[1:]]      # [out_j, in_j]
    b_cols = [jnp.reshape(b, (-1, 1)).astype(jnp.float32) for b in biases]

    # Batch tile: whole batch if it fits, otherwise a large lane-aligned tile.
    if batch <= block_batch:
        tb = batch
    else:
        tb = max(128, (block_batch // 128) * 128)
    grid = (pl.cdiv(batch, tb),)       # ragged last tile handled by Pallas (no jnp.pad)

    in_specs = [pl.BlockSpec((tb, d), lambda n: (n, 0)) for d in in_dims]
    params = []

    def add_param(p):
        params.append(p)
        # Whole-array block, constant index_map -> fetched once, VMEM-resident.
        in_specs.append(pl.BlockSpec(p.shape, lambda n: (0, 0)))

    for p in w0_parts:
        add_param(p)
    add_param(b_cols[0])
    for j in range(1, n_layers):
        add_param(w_rest[j - 1])
        add_param(b_cols[j])

    out_specs = pl.BlockSpec((out_dim, tb), lambda n: (0, n))
    out_shape = jax.ShapeDtypeStruct((out_dim, batch), jnp.float32)

    kernel = functools.partial(_critic_kernel, n_inputs=len(xs),
                               n_layers=n_layers, activation=act)

    cp = dict(dimension_semantics=("parallel",))   # batch tiles independent (megacore)
    if vmem_limit_bytes is not None:
        cp["vmem_limit_bytes"] = vmem_limit_bytes

    v_t = pl.pallas_call(
        kernel,
        grid=grid,
        in_specs=in_specs,
        out_specs=out_specs,
        out_shape=out_shape,
        compiler_params=pltpu.CompilerParams(**cp),
    )(*xs, *params)

    # [out_dim, B] -> [B, out_dim]; for out_dim == 1 this is a free reshape.
    return jnp.reshape(v_t, (batch, out_dim)) if out_dim == 1 else v_t.T


def orthogonal_init(key, out_dim, in_dim):
    """Deterministic orthogonal init (same spirit as nn.init.orthogonal_)."""
    n = max(out_dim, in_dim)
    a = jax.random.normal(key, (n, n), dtype=jnp.float32)
    q, r = jnp.linalg.qr(a)
    q = q * jnp.sign(jnp.diagonal(r))
    return q[:out_dim, :in_dim]            # [out, in], like torch Linear.weight


if __name__ == "__main__":
    # Critic(layer_num=3, input_dim=16, output_dim=1, hidden_dim=32, activation=tanh)
    layer_num, input_dim, output_dim, hidden_dim = 3, 16, 1, 32

    key = jax.random.PRNGKey(0)
    layer_units = [input_dim] + [hidden_dim] * (layer_num - 1) + [output_dim]

    weights, biases = [], []
    for i in range(len(layer_units) - 1):
        key, sub = jax.random.split(key)
        w_torch = orthogonal_init(sub, layer_units[i + 1], layer_units[i])   # [out, in]
        weights.append(jnp.asarray(w_torch.T))                               # [in, out]
        biases.append(jnp.zeros((1, layer_units[i + 1]), jnp.float32))       # bias = 0

    def ref_forward(x):
        h = x
        for i, (w, b) in enumerate(zip(weights, biases)):
            h = h @ w + b
            if i < len(weights) - 1:
                h = jnp.tanh(h)
        return h

    # --- small-batch check: Critic(*x) with a state/action pair (12 + 4 = 16) ---
    key, k1, k2 = jax.random.split(key, 3)
    state = jax.random.normal(k1, (8, 12), dtype=jnp.float32)
    action = jax.random.normal(k2, (8, 4), dtype=jnp.float32)

    v_small = critic_forward(state, action, weights=weights, biases=biases)
    jax.block_until_ready(v_small)
    ref_small = ref_forward(jnp.concatenate([state, action], axis=-1))
    assert v_small.shape == (8, output_dim)
    assert jnp.allclose(v_small, ref_small, atol=5e-5, rtol=5e-5), "value mismatch (small batch)"

    # --- multi-tile grid path with a ragged last tile (no padding copies) ---
    key, k3 = jax.random.split(key)
    x_big = jax.random.normal(k3, (300, input_dim), dtype=jnp.float32)
    v_big = critic_forward(x_big, weights=weights, biases=biases, block_batch=128)
    jax.block_until_ready(v_big)
    assert v_big.shape == (300, output_dim)
    assert jnp.allclose(v_big, ref_forward(x_big), atol=5e-5, rtol=5e-5), "value mismatch (grid path)"

    print("KERNEL_OK")
</pallas_src>

<mosaic_0001>
module attributes {stable_mosaic.version = 11 : i64} {
  func.func @_critic_kernel(%arg0: i32, %arg1: memref<8x12xf32, #tpu.memory_space<vmem>>, %arg2: memref<8x4xf32, #tpu.memory_space<vmem>>, %arg3: memref<32x12xf32, #tpu.memory_space<vmem>>, %arg4: memref<32x4xf32, #tpu.memory_space<vmem>>, %arg5: memref<32x1xf32, #tpu.memory_space<vmem>>, %arg6: memref<32x32xf32, #tpu.memory_space<vmem>>, %arg7: memref<32x1xf32, #tpu.memory_space<vmem>>, %arg8: memref<1x32xf32, #tpu.memory_space<vmem>>, %arg9: memref<1x1xf32, #tpu.memory_space<vmem>>, %arg10: memref<1x8xf32, #tpu.memory_space<vmem>>) attributes {dimension_semantics = [#tpu.dimension_semantics<parallel>], iteration_bounds = array<i64: 1>, scalar_prefetch = 0 : i64, scratch_operands = 0 : i64, tpu.core_type = #tpu.core_type<tc>, window_params = [{transform_indices = @transform_0, window_bounds = array<i64: 8, 12>}, {transform_indices = @transform_1, window_bounds = array<i64: 8, 4>}, {pipeline_mode = #tpu.pipeline_mode<synchronous>, transform_indices = @transform_2, window_bounds = array<i64: 32, 12>}, {pipeline_mode = #tpu.pipeline_mode<synchronous>, transform_indices = @transform_3, window_bounds = array<i64: 32, 4>}, {pipeline_mode = #tpu.pipeline_mode<synchronous>, transform_indices = @transform_4, window_bounds = array<i64: 32, 1>}, {pipeline_mode = #tpu.pipeline_mode<synchronous>, transform_indices = @transform_5, window_bounds = array<i64: 32, 32>}, {pipeline_mode = #tpu.pipeline_mode<synchronous>, transform_indices = @transform_6, window_bounds = array<i64: 32, 1>}, {pipeline_mode = #tpu.pipeline_mode<synchronous>, transform_indices = @transform_7, window_bounds = array<i64: 1, 32>}, {pipeline_mode = #tpu.pipeline_mode<synchronous>, transform_indices = @transform_8, window_bounds = array<i64: 1, 1>}, {transform_indices = @transform_9, window_bounds = array<i64: 1, 8>}]} {
    %c0 = arith.constant 0 : index
    %c0_0 = arith.constant 0 : index
    %0 = vector.load %arg3[%c0, %c0_0] : memref<32x12xf32, #tpu.memory_space<vmem>>, vector<32x12xf32>
    %c0_1 = arith.constant 0 : index
    %c0_2 = arith.constant 0 : index
    %1 = vector.load %arg1[%c0_1, %c0_2] : memref<8x12xf32, #tpu.memory_space<vmem>>, vector<8x12xf32>
    %cst = arith.constant dense<0.000000e+00> : vector<32x8xf32>
    %2 = tpu.matmul %0, %1, %cst {dimension_numbers = #tpu.dot_dimension_numbers<[1], [1], [0], [0], [0, 0, 1, 0], [], []>} : vector<32x12xf32>, vector<8x12xf32>, vector<32x8xf32> -> vector<32x8xf32>
    %c0_3 = arith.constant 0 : index
    %c0_4 = arith.constant 0 : index
    %3 = vector.load %arg4[%c0_3, %c0_4] : memref<32x4xf32, #tpu.memory_space<vmem>>, vector<32x4xf32>
    %c0_5 = arith.constant 0 : index
    %c0_6 = arith.constant 0 : index
    %4 = vector.load %arg2[%c0_5, %c0_6] : memref<8x4xf32, #tpu.memory_space<vmem>>, vector<8x4xf32>
    %cst_7 = arith.constant dense<0.000000e+00> : vector<32x8xf32>
    %5 = tpu.matmul %3, %4, %cst_7 {dimension_numbers = #tpu.dot_dimension_numbers<[1], [1], [0], [0], [0, 0, 1, 0], [], []>} : vector<32x4xf32>, vector<8x4xf32>, vector<32x8xf32> -> vector<32x8xf32>
    %6 = arith.addf %2, %5 : vector<32x8xf32>
    %c0_8 = arith.constant 0 : index
    %c0_9 = arith.constant 0 : index
    %7 = vector.load %arg5[%c0_8, %c0_9] : memref<32x1xf32, #tpu.memory_space<vmem>>, vector<32x1xf32>
    %8 = vector.broadcast %7 : vector<32x1xf32> to vector<32x8xf32>
    %9 = arith.addf %6, %8 : vector<32x8xf32>
    %10 = math.tanh %9 : vector<32x8xf32>
    %c0_10 = arith.constant 0 : index
    %c0_11 = arith.constant 0 : index
    %11 = vector.load %arg6[%c0_10, %c0_11] : memref<32x32xf32, #tpu.memory_space<vmem>>, vector<32x32xf32>
    %c0_12 = arith.constant 0 : index
    %c0_13 = arith.constant 0 : index
    %12 = vector.load %arg7[%c0_12, %c0_13] : memref<32x1xf32, #tpu.memory_space<vmem>>, vector<32x1xf32>
    %cst_14 = arith.constant dense<0.000000e+00> : vector<32x8xf32>
    %13 = tpu.matmul %11, %10, %cst_14 {dimension_numbers = #tpu.dot_dimension_numbers<[1], [0], [0], [1], [0, 0, 1, 1], [], []>} : vector<32x32xf32>, vector<32x8xf32>, vector<32x8xf32> -> vector<32x8xf32>
    %14 = vector.broadcast %12 : vector<32x1xf32> to vector<32x8xf32>
    %15 = arith.addf %13, %14 : vector<32x8xf32>
    %16 = math.tanh %15 : vector<32x8xf32>
    %c0_15 = arith.constant 0 : index
    %c0_16 = arith.constant 0 : index
    %17 = vector.load %arg8[%c0_15, %c0_16] : memref<1x32xf32, #tpu.memory_space<vmem>>, vector<1x32xf32>
    %c0_17 = arith.constant 0 : index
    %c0_18 = arith.constant 0 : index
    %18 = vector.load %arg9[%c0_17, %c0_18] : memref<1x1xf32, #tpu.memory_space<vmem>>, vector<1x1xf32>
    %cst_19 = arith.constant dense<0.000000e+00> : vector<1x8xf32>
    %19 = tpu.matmul %17, %16, %cst_19 {dimension_numbers = #tpu.dot_dimension_numbers<[1], [0], [0], [1], [0, 0, 1, 1], [], []>} : vector<1x32xf32>, vector<32x8xf32>, vector<1x8xf32> -> vector<1x8xf32>
    %20 = vector.broadcast %18 : vector<1x1xf32> to vector<1x8xf32>
    %21 = arith.addf %19, %20 : vector<1x8xf32>
    %c0_20 = arith.constant 0 : index
    %c0_21 = arith.constant 0 : index
    %22 = vector.load %arg10[%c0_20, %c0_21] : memref<1x8xf32, #tpu.memory_space<vmem>>, vector<1x8xf32>
    tpu.vector_store %arg10[%c0_20, %c0_21], %21 {strides = array<i32>} : memref<1x8xf32, #tpu.memory_space<vmem>>, vector<1x8xf32>,
    return
  }
  func.func @transform_0(%arg0: i32) -> (i32, i32) {
    %c0_i32 = arith.constant 0 : i32
    %c0_i32_0 = arith.constant 0 : i32
    return %arg0, %c0_i32 : i32, i32
  }
  func.func @transform_1(%arg0: i32) -> (i32, i32) {
    %c0_i32 = arith.constant 0 : i32
    %c0_i32_0 = arith.constant 0 : i32
    return %arg0, %c0_i32 : i32, i32
  }
  func.func @transform_2(%arg0: i32) -> (i32, i32) {
    %c0_i32 = arith.constant 0 : i32
    %c0_i32_0 = arith.constant 0 : i32
    %c0_i32_1 = arith.constant 0 : i32
    return %c0_i32, %c0_i32_0 : i32, i32
  }
  func.func @transform_3(%arg0: i32) -> (i32, i32) {
    %c0_i32 = arith.constant 0 : i32
    %c0_i32_0 = arith.constant 0 : i32
    %c0_i32_1 = arith.constant 0 : i32
    return %c0_i32, %c0_i32_0 : i32, i32
  }
  func.func @transform_4(%arg0: i32) -> (i32, i32) {
    %c0_i32 = arith.constant 0 : i32
    %c0_i32_0 = arith.constant 0 : i32
    %c0_i32_1 = arith.constant 0 : i32
    return %c0_i32, %c0_i32_0 : i32, i32
  }
  func.func @transform_5(%arg0: i32) -> (i32, i32) {
    %c0_i32 = arith.constant 0 : i32
    %c0_i32_0 = arith.constant 0 : i32
    %c0_i32_1 = arith.constant 0 : i32
    return %c0_i32, %c0_i32_0 : i32, i32
  }
  func.func @transform_6(%arg0: i32) -> (i32, i32) {
    %c0_i32 = arith.constant 0 : i32
    %c0_i32_0 = arith.constant 0 : i32
    %c0_i32_1 = arith.constant 0 : i32
    return %c0_i32, %c0_i32_0 : i32, i32
  }
  func.func @transform_7(%arg0: i32) -> (i32, i32) {
    %c0_i32 = arith.constant 0 : i32
    %c0_i32_0 = arith.constant 0 : i32
    %c0_i32_1 = arith.constant 0 : i32
    return %c0_i32, %c0_i32_0 : i32, i32
  }
  func.func @transform_8(%arg0: i32) -> (i32, i32) {
    %c0_i32 = arith.constant 0 : i32
    %c0_i32_0 = arith.constant 0 : i32
    %c0_i32_1 = arith.constant 0 : i32
    return %c0_i32, %c0_i32_0 : i32, i32
  }
  func.func @transform_9(%arg0: i32) -> (i32, i32) {
    %c0_i32 = arith.constant 0 : i32
    %c0_i32_0 = arith.constant 0 : i32
    return %c0_i32, %arg0 : i32, i32
  }
}

</mosaic_0001>

<bundles_post_ra>
// kernel: tpu_custom_call.1
= control target key start
LH: loop header
LB: loop body
LE: loop exit
PB: predicated region body
PF: predicated region fallthrough
CT: control target
= control target key end

     0   :  { %s778_s0 = inlined_call_operand.vmem [shape: f32[8,12], index: 0, kind: input, shape index: {}]   ;;  %s779_s1 = inlined_call_operand.vmem [shape: f32[8,4], index: 1, kind: input, shape index: {}]   ;;  %s780_s2 = inlined_call_operand.vmem [shape: f32[32,12], index: 2, kind: input, shape index: {}]   ;;  %s781_s3 = inlined_call_operand.vmem [shape: f32[32,4], index: 3, kind: input, shape index: {}]   ;;  %s782_s4 = inlined_call_operand.vmem [shape: f32[32,1], index: 4, kind: input, shape index: {}]   ;;  %s783_s5 = inlined_call_operand.vmem [shape: f32[32,32], index: 5, kind: input, shape index: {}]   ;;  %s784_s6 = inlined_call_operand.vmem [shape: f32[32,1], index: 6, kind: input, shape index: {}]   ;;  %s785_s7 = inlined_call_operand.vmem [shape: f32[1,32], index: 7, kind: input, shape index: {}]   ;;  %s786_s8 = inlined_call_operand.<no memory space> [shape: f32[1,1], index: 8, kind: input, shape index: {}]   ;;  %s787_s9 = inlined_call_operand.hbm [shape: f32[1,8], index: 9, kind: output, shape index: {}]  }
   0x1   :  { %v14_v0 = vstv %s786_s8 }
   0x2   :  { %15 = vst [vmem:[#allocation2] sm:$0x1] %v14_v0 }
   0x3   :  { %v44_v1 = vld [vmem:[%s779_s1] sm:$0xff]  ;;  %vm45_vm0 = vcmask 31744   ;;  %vm146_vm1 = vcmask 97280   ;;  %v41_v5 = vld [vmem:[%s781_s3 + $0x8] sm:$0xff]  ;;  %v42_v7 = vld [vmem:[%s781_s3 + $0x10] sm:$0xff]  ;;  %v632_v9 = vmov 0  }
   0x4   :  { %v39_v2 = vld [vmem:[%s778_s0] sm:$0xff]  ;;  %547 = vmatprep.subr.msk.mxu0 %vm45_vm0, %v44_v1  ;;  %v36_v6 = vld [vmem:[%s780_s2 + $0x8] sm:$0xff]  ;;  %v37_v8 = vld [vmem:[%s780_s2 + $0x10] sm:$0xff]  ;;  %592 = vset.pattern.permute.xlu0 %v632_v9 }
   0x5   :  { %v40_v3 = vld [vmem:[%s781_s3] sm:$0xff]  ;;  %555 = vmatprep.subr.msk.mxu1 %vm146_vm1, %v39_v2  ;;  %548 = vmatpush3.xpose.msk.msra.mxu0 %vm45_vm0, %v44_v1  ;;  %v250_v10 = vld [vmem:[%s782_s4 + $0x18] sm:$0xff]  ;;  %v248_v11 = vld [vmem:[%s782_s4 + $0x8] sm:$0xff] }
   0x6   :  { %v35_v4 = vld [vmem:[%s780_s2] sm:$0xff]  ;;  %556 = vmatpush3.xpose.msk.msra.mxu1 %vm146_vm1, %v39_v2  ;;  %549 = vmatprep.mubr.msk.f32.mxu0 %vm45_vm0, %v40_v3  ;;  %v43_v12 = vld [vmem:[%s781_s3 + $0x18] sm:$0xff] }
   0x7   :  { %557 = vmatprep.mubr.msk.f32.mxu1 %vm146_vm1, %v35_v4  ;;  %593 = vset.pattern.permute.xlu1 %v632_v9  ;;  %v38_v13 = vld [vmem:[%s780_s2 + $0x18] sm:$0xff] }
   0x8   :  { %550 = vmatmul.mubr.msk.f32.vlgmr.msra.gmra.mxu0 %vm45_vm0, %v41_v5 }
   0x9   :  { %558 = vmatmul.mubr.msk.f32.vlgmr.msra.gmra.mxu1 %vm146_vm1, %v36_v6  ;;  %552 = vmatprep.mubr.msk.f32.mxu0 %vm45_vm0, %v42_v7 }
   0xa   :  { %560 = vmatprep.mubr.msk.f32.mxu1 %vm146_vm1, %v37_v8 }
   0xb   :  { %16 = vsyncpa [#allocation4], 0  ;;  %268 = vperm.xlu0 %592, %v250_v10   ;;  %258 = vperm.xlu1 %593, %v248_v11   ;;  %v249_v14 = vld [vmem:[%s782_s4 + $0x10] sm:$0xff]  ;;  %v247_v15 = vld [vmem:[%s782_s4] sm:$0xff]  ;;  %vm307_vm2 = vcmask 261120   ;;  %v633_v49 = vmov 0.0   ;;  %v416_v3 = vlaneseq }
   0xc   :  { %553 = vmatmul.mubr.msk.f32.gmra.mxu0 %vm45_vm0, %v43_v12  ;;  %v286_v16 = vld [vmem:[%s784_s6 + $0x18] sm:$0xff]  ;;  %v285_v17 = vld [vmem:[%s784_s6 + $0x10] sm:$0xff]  ;;  %v284_v18 = vld [vmem:[%s784_s6 + $0x8] sm:$0xff]  ;;  %577 = vmatprep.subr.mxu1 %v633_v49  ;;  %vm634_vm3 = vmmov 0   ;;  %s635_s25 = smov [#allocation3]   ;;  %vm493_vm4 = vcmask 57344  }
   0xd   :  { %561 = vmatmul.mubr.msk.f32.gmra.mxu1 %vm146_vm1, %v38_v13  ;;  %v283_v19 = vld [vmem:[%s784_s6] sm:$0xff]  ;;  %v280_v46 = vld [vmem:[%s783_s5 + $0x8] sm:$0xff]  ;;  %v281_v47 = vld [vmem:[%s783_s5 + $0x10] sm:$0xff]  ;;  %v417_v4 = vshrl.u32 %v416_v3, 7  ;;  %s501_s26 = sshll.u32 %s635_s25, 4  ;;  %s502_s26 = int_to_ptr.vmem [resolvable:$true] %s501_s26 }
   0xe   :  { %v410_v20 = vld [vmem:[#allocation2] sm:$0x1]  ;;  %v282_v48 = vld [vmem:[%s783_s5 + $0x18] sm:$0xff]  ;;  %585 = vmatprep.mubr.msk.f32.mxu1 %vm634_vm3, %v633_v49  ;;  %s610_s27 = scalar_lea.vmem %s502_s26, 16  ;;  %p615_p1 = scmp.lt.s32.totalorder %s502_s26, %s502_s26 }
   0xf   :  { %263 = vperm.xlu0 %592, %v249_v14   ;;  %253 = vperm.xlu1 %593, %v247_v15   ;;  %v279_v21 = vld [vmem:[%s783_s5] sm:$0xff]  ;;  %v418_v5 = vsub.s32 0, %v417_v4  ;;  %p611_p0 = scmp.ne.s32.totalorder %s502_s26, %s610_s27 }
  0x10   :  { %571 = vmatprep.mubr.msk.f32.mxu0 %vm307_vm2, %v279_v21  ;;  %v409_v1 = vld [vmem:[%s785_s7] sm:$0x1]  ;;  %s614_s7 = scalar_lea.vmem %s502_s26, 32 }
  0x11   :  { %p616_p2 = scmp.lt.s32.totalorder %s614_s7, %s610_s27 }
  0x13   :  { %304 = vperm.xlu0 %592, %v286_v16   ;;  %299 = vperm.xlu1 %593, %v285_v17   ;;  %p617_p3 = por %p616_p2, %p615_p1 }
  0x15   :  { %p618_p4 = pnand %p617_p3, %p611_p0 }
  0x17   :  { %294 = vperm.xlu0 %592, %v284_v18   ;;  %289 = vperm.xlu1 %593, %v283_v19  }
  0x1b   :  { %413 = vperm.xlu0 %592, %v410_v20  }
  0x86   :  { %v269_v24 = vpop.permute.xlu0 %268  ;;  %v259_v27 = vpop.permute.xlu1 %258 }
  0x8a   :  { %v264_v37 = vpop.permute.xlu0 %263  ;;  %v254_v40 = vpop.permute.xlu1 %253 }
  0x8e   :  { %v305_v50 = vpop.permute.xlu0 %304  ;;  %v300_v52 = vpop.permute.xlu1 %299 }
  0x92   :  { %v295_v56 = vpop.permute.xlu0 %294  ;;  %v290_v60 = vpop.permute.xlu1 %289 }
  0x96   :  { %v414_v6 = vpop.permute.xlu0 %413 }
  0x97   :  { %v419_v7 = vrot.slane %v414_v6, %v418_v5 }
  0xc8   :  { %v551_v22 = vpop.f32.mrf.mxu0 }
  0xc9   :  { %v559_v23 = vpop.f32.mrf.mxu1 }
  0xca   :  { %v127_v25 = vpop.f32.mrf.mxu0  ;;  %v234_v30 = vadd.f32 %v559_v23, %v551_v22 }
  0xcb   :  { %v228_v26 = vpop.f32.mrf.mxu1 }
  0xcc   :  { %v554_v28 = vpop.f32.mrf.mxu0  ;;  %v229_v34 = vadd.f32 %v228_v26, %v127_v25  ;;  %v272_v38 = vadd.f32 %v259_v27, %v234_v30 }
  0xcd   :  { %v562_v29 = vpop.f32.mrf.mxu1 }
  0xce   :  { %v244_v31 = vadd.f32 %v562_v29, %v554_v28  ;;  %v137_v32 = vpop.f32.mrf.mxu0  ;;  %v271_v41 = vadd.f32 %v254_v40, %v229_v34 }
  0xcf   :  { %v238_v33 = vpop.f32.mrf.mxu1 }
  0xd0   :  { %v274_v35 = vadd.f32 %v269_v24, %v244_v31  ;;  %v239_v36 = vadd.f32 %v238_v33, %v137_v32 }
  0xd2   :  { %594 = vtanh.f32 %v274_v35  ;;  %v273_v39 = vadd.f32 %v264_v37, %v239_v36 }
  0xd4   :  { %596 = vtanh.f32 %v273_v39 }
  0xd5   :  { %598 = vtanh.f32 %v272_v38 }
  0xd6   :  { %600 = vtanh.f32 %v271_v41 }
  0xdf   :  { %v595_v42 = vpop.eup %594 }
  0xe0   :  { %563 = vmatprep.subr.mxu0 %v595_v42 }
  0xe1   :  { %v597_v43 = vpop.eup %596  ;;  %564 = vmatpush3.msra.mxu0 %v595_v42 }
  0xe2   :  { %565 = vmatprep.subr.mxu0 %v597_v43  ;;  %v599_v44 = vpop.eup %598 }
  0xe3   :  { %566 = vmatpush3.msra.mxu0 %v597_v43  ;;  %v601_v45 = vpop.eup %600 }
  0xe4   :  { %567 = vmatprep.subr.mxu0 %v599_v44 }
  0xe5   :  { %568 = vmatpush3.msra.mxu0 %v599_v44 }
  0xe6   :  { %569 = vmatprep.subr.mxu0 %v601_v45 }
  0xe7   :  { %570 = vmatpush3.msra.mxu0 %v601_v45 }
  0xe8   :  { %572 = vmatmul.mubr.msk.f32.vlgmr.msra.gmra.mxu0 %vm307_vm2, %v280_v46 }
  0xe9   :  { %574 = vmatprep.mubr.msk.f32.mxu0 %vm307_vm2, %v281_v47 }
  0xec   :  { %575 = vmatmul.mubr.msk.f32.gmra.mxu0 %vm307_vm2, %v282_v48 }
 0x1a8   :  { %v573_v51 = vpop.f32.mrf.mxu0 }
 0x1a9   :  { %v392_v58 = vadd.f32 %v573_v51, %v295_v56 }
 0x1aa   :  { %v386_v53 = vpop.f32.mrf.mxu0 }
 0x1ab   :  { %v387_v61 = vadd.f32 %v386_v53, %v290_v60 }
 0x1ac   :  { %v576_v54 = vpop.f32.mrf.mxu0 }
 0x1ad   :  { %v402_v55 = vadd.f32 %v576_v54, %v305_v50 }
 0x1ae   :  { %v396_v57 = vpop.f32.mrf.mxu0 }
 0x1af   :  { %602 = vtanh.f32 %v402_v55  ;;  %v397_v59 = vadd.f32 %v396_v57, %v300_v52 }
 0x1b1   :  { %604 = vtanh.f32 %v397_v59 }
 0x1b2   :  { %606 = vtanh.f32 %v392_v58 }
 0x1b3   :  { %608 = vtanh.f32 %v387_v61 }
 0x1bc   :  { %v603_v62 = vpop.eup %602 }
 0x1bd   :  { %578 = vmatpush3.msra.mxu1 %v603_v62 }
 0x1be   :  { %v605_v63 = vpop.eup %604  ;;  %579 = vmatprep.subr.mxu1 %v633_v49 }
 0x1bf   :  { %580 = vmatpush3.msra.mxu1 %v605_v63  ;;  %v607_v0 = vpop.eup %606 }
 0x1c0   :  { %581 = vmatprep.subr.mxu1 %v633_v49  ;;  %v609_v2 = vpop.eup %608 }
 0x1c1   :  { %582 = vmatpush3.msra.mxu1 %v607_v0 }
 0x1c2   :  { %583 = vmatprep.subr.mxu1 %v633_v49 }
 0x1c3   :  { %584 = vmatpush3.msra.mxu1 %v609_v2 }
 0x1c4   :  { %586 = vmatmul.mubr.msk.f32.vlgmr.msra.gmra.mxu1 %vm307_vm2, %v409_v1 }
 0x284   :  { %v489_v8 = vpop.f32.mrf.mxu1 }
 0x285   :  { %v490_v9 = vadd.f32 %v489_v8, %v419_v7 }
 0x286   :  { %v587_v10 = vpop.f32.mrf.mxu1 }
 0x287   :  { %494 = vst.msk [vmem:[#allocation3] sm:$0x1] %vm493_vm4, %v490_v9 }
 0x288   :  { %621 = shalt.err (!%p618_p4)
}
 0x289   :  { %504 = dma.vmem_to_hbm [thread:$0]  %s502_s26, 16, %s787_s9, [#allocation4]  }
 0x28a   :  { %630 = dma.done.wait [#allocation4], 16  }
 0x28b   :  { %631 = vsyncadd [#allocation4], 4294967280 }
 0x28c   :  { %508 = vsyncpa [#allocation4], 1 }

</bundles_post_ra>
